<compile_context>
chip_gen: v6e
topology: v6e:2x2x1
jax: 0.10.0
libtpu: 0.0.40
codegen_flags: <defaults>
</compile_context>

<pallas_src>
import functools

import jax
import jax.numpy as jnp
from jax import lax
from jax.experimental import pallas as pl
from jax.experimental.pallas import tpu as pltpu


_MiB = 1024 * 1024
_vmem_limit_cache = None


# ----------------------------- helpers --------------------------------------

def _round_up(x, m):
    return ((x + m - 1) // m) * m


def _round_down(x, m):
    return (x // m) * m


def _vmem_limit_bytes():
    """Generation-aware scoped-VMEM limit.

    v5e/v6e have 128 MiB physical VMEM -> use a generous 96 MiB limit so big
    row tiles / resident weights are allowed; v7x has only 64 MiB physical ->
    keep the conservative 32 MiB scoped limit.
    """
    global _vmem_limit_cache
    if _vmem_limit_cache is None:
        try:
            phys = pltpu.get_tpu_info().vmem_capacity_bytes
        except Exception:  # unknown/emulated target -> be conservative
            phys = 64 * _MiB
        _vmem_limit_cache = 96 * _MiB if phys >= 128 * _MiB else 32 * _MiB
    return _vmem_limit_cache


def _row_multiple(itemsize):
    # Sublane packing: f32 min tile (8,128), bf16 (16,128), int8/fp8 (32,128).
    return max(8, 32 // max(itemsize, 1))


def _pick_tile_rows(rows, d_in, d_out, itemsize):
    """VMEM-budget-aware row tile. No wrapper-side padding is ever needed:
    either the tile equals the full row count, or it is a multiple of the
    dtype's sublane packing and the ragged last tile is masked by Pallas."""
    mult = _row_multiple(itemsize)
    budget = _vmem_limit_bytes() // 2                 # leave room for weights/consts
    bytes_per_row = (d_in + d_out) * max(itemsize, 2) * 2   # double-buffered in+out
    cap = budget // max(bytes_per_row, 1)
    cap = _round_down(max(128, min(1024, cap)), mult)
    rows_up = _round_up(rows, mult)
    if rows_up > 512:
        # keep >= 2 row tiles so both v7x TensorCores get work
        cap = min(cap, _round_up((rows_up + 1) // 2, mult))
    if rows <= cap:
        return rows            # single full-rows block (always layout-legal)
    return cap


def _pick_tile_cols(d_in, d_out, w_itemsize):
    """Output-feature (N) tile for the weight: full width if it fits the VMEM
    budget, otherwise a lane-dense multiple of 128 so the weight streams."""
    budget = _vmem_limit_bytes() // 3                 # double-buffered weight block
    if d_out <= 128 or 2 * d_in * d_out * w_itemsize <= budget:
        return d_out
    tn = budget // max(2 * d_in * w_itemsize, 1)
    tn = max(128, min(512, _round_down(tn, 128)))
    return d_out if tn >= d_out else tn


def _compiler_params(n_axes):
    return pltpu.CompilerParams(
        dimension_semantics=("parallel",) * n_axes,
        vmem_limit_bytes=_vmem_limit_bytes(),
    )


# ----------------------------- kernels --------------------------------------

def _layernorm_kernel(x_ref, g_ref, b_ref, o_ref, *, eps):
    # x_ref: (tile_rows, D) ; g_ref/b_ref: (1, D)
    x = x_ref[...].astype(jnp.float32)
    mean = jnp.mean(x, axis=-1, keepdims=True)
    c = x - mean
    var = jnp.mean(c * c, axis=-1, keepdims=True)
    inv = lax.rsqrt(var + eps)
    y = c * inv * g_ref[...].astype(jnp.float32) + b_ref[...].astype(jnp.float32)
    o_ref[...] = y.astype(o_ref.dtype)


def _ln_linear_kernel(x_ref, g_ref, b_ref, w_ref, bias_ref, o_ref, *, eps):
    # Fused: LayerNorm the row tile in-register, then MXU matmul against the
    # (D_in, tile_cols) weight block.  Activations are cast to the weight
    # dtype (bf16) so the MXU runs bf16 x bf16 with f32 accumulation.
    x = x_ref[...].astype(jnp.float32)
    mean = jnp.mean(x, axis=-1, keepdims=True)
    c = x - mean
    var = jnp.mean(c * c, axis=-1, keepdims=True)
    inv = lax.rsqrt(var + eps)
    y = c * inv * g_ref[...].astype(jnp.float32) + b_ref[...].astype(jnp.float32)
    acc = jnp.dot(y.astype(w_ref.dtype), w_ref[...],
                  preferred_element_type=jnp.float32)
    o_ref[...] = (acc + bias_ref[...].astype(jnp.float32)).astype(o_ref.dtype)


def _linear_kernel(x_ref, w_ref, b_ref, o_ref):
    acc = jnp.dot(x_ref[...].astype(w_ref.dtype), w_ref[...],
                  preferred_element_type=jnp.float32)
    o_ref[...] = (acc + b_ref[...].astype(jnp.float32)).astype(o_ref.dtype)


# ----------------------------- wrappers --------------------------------------

def layernorm(x, gamma, beta, *, eps=1e-5, tile_rows=None):
    """LayerNorm over the last axis via a Pallas TPU kernel. x: (..., D)."""
    orig_shape = x.shape
    D = orig_shape[-1]
    x2 = x.reshape(-1, D)
    rows = x2.shape[0]
    tile_rows = tile_rows or _pick_tile_rows(rows, D, D, x.dtype.itemsize)

    g2 = gamma.reshape(1, D)
    b2 = beta.reshape(1, D)

    cost = pl.CostEstimate(
        flops=8 * rows * D,
        transcendentals=rows,
        bytes_accessed=(2 * rows * D + 2 * D) * x.dtype.itemsize,
    )
    out = pl.pallas_call(
        functools.partial(_layernorm_kernel, eps=eps),
        out_shape=jax.ShapeDtypeStruct((rows, D), x.dtype),
        grid_spec=pl.GridSpec(
            grid=(pl.cdiv(rows, tile_rows),),
            in_specs=[
                pl.BlockSpec((tile_rows, D), lambda i: (i, 0)),
                pl.BlockSpec((1, D), lambda i: (0, 0)),
                pl.BlockSpec((1, D), lambda i: (0, 0)),
            ],
            out_specs=pl.BlockSpec((tile_rows, D), lambda i: (i, 0)),
        ),
        compiler_params=_compiler_params(1),
        cost_estimate=cost,
    )(x2, g2, b2)
    return out.reshape(orig_shape)


def layernorm_linear(x, gamma, beta, w, b, *, eps=1e-5,
                     tile_rows=None, tile_cols=None):
    """Fused LayerNorm(x) @ w + b in a single pallas_call. x: (..., D_in)."""
    orig_shape = x.shape
    D_in = orig_shape[-1]
    D_out = w.shape[1]
    x2 = x.reshape(-1, D_in)
    rows = x2.shape[0]
    tile_rows = tile_rows or _pick_tile_rows(rows, D_in, D_out, x.dtype.itemsize)
    tile_cols = tile_cols or _pick_tile_cols(D_in, D_out, w.dtype.itemsize)

    g2 = gamma.reshape(1, D_in)
    bt2 = beta.reshape(1, D_in)
    b2 = b.reshape(1, D_out).astype(jnp.float32)

    # TODO(synk): add a K (D_in) grid axis with an f32 VMEM accumulator
    # (pl.when init/finalize) once D_in itself no longer fits a single block.
    # TODO(synk): single-buffer the constant operands (gamma/beta/bias and the
    # weight when it fits whole) via pipeline_mode=pl.Buffered(1) once verified
    # on the target toolchain; N-tiling + bf16 already bounds weight residency.
    cost = pl.CostEstimate(
        flops=2 * rows * D_in * D_out + 8 * rows * D_in,
        transcendentals=rows,
        bytes_accessed=(rows * D_in * x.dtype.itemsize
                        + rows * D_out * x.dtype.itemsize
                        + D_in * D_out * w.dtype.itemsize
                        + (2 * D_in + D_out) * 4),
    )
    out = pl.pallas_call(
        functools.partial(_ln_linear_kernel, eps=eps),
        out_shape=jax.ShapeDtypeStruct((rows, D_out), x.dtype),
        grid_spec=pl.GridSpec(
            grid=(pl.cdiv(rows, tile_rows), pl.cdiv(D_out, tile_cols)),
            in_specs=[
                pl.BlockSpec((tile_rows, D_in), lambda i, j: (i, 0)),
                pl.BlockSpec((1, D_in), lambda i, j: (0, 0)),
                pl.BlockSpec((1, D_in), lambda i, j: (0, 0)),
                pl.BlockSpec((D_in, tile_cols), lambda i, j: (0, j)),
                pl.BlockSpec((1, tile_cols), lambda i, j: (0, j)),
            ],
            out_specs=pl.BlockSpec((tile_rows, tile_cols), lambda i, j: (i, j)),
        ),
        compiler_params=_compiler_params(2),
        cost_estimate=cost,
    )(x2, g2, bt2, w, b2)
    return out.reshape(orig_shape[:-1] + (D_out,))


def linear(x, w, b, *, tile_rows=None, tile_cols=None):
    """y = x @ w + b, row- and column-tiled Pallas TPU kernel."""
    orig_shape = x.shape
    D_in = orig_shape[-1]
    D_out = w.shape[1]
    x2 = x.reshape(-1, D_in)
    rows = x2.shape[0]
    tile_rows = tile_rows or _pick_tile_rows(rows, D_in, D_out, x.dtype.itemsize)
    tile_cols = tile_cols or _pick_tile_cols(D_in, D_out, w.dtype.itemsize)
    b2 = b.reshape(1, D_out).astype(jnp.float32)

    out = pl.pallas_call(
        _linear_kernel,
        out_shape=jax.ShapeDtypeStruct((rows, D_out), x.dtype),
        grid_spec=pl.GridSpec(
            grid=(pl.cdiv(rows, tile_rows), pl.cdiv(D_out, tile_cols)),
            in_specs=[
                pl.BlockSpec((tile_rows, D_in), lambda i, j: (i, 0)),
                pl.BlockSpec((D_in, tile_cols), lambda i, j: (0, j)),
                pl.BlockSpec((1, tile_cols), lambda i, j: (0, j)),
            ],
            out_specs=pl.BlockSpec((tile_rows, tile_cols), lambda i, j: (i, j)),
        ),
        compiler_params=_compiler_params(2),
        cost_estimate=pl.CostEstimate(
            flops=2 * rows * D_in * D_out,
            transcendentals=0,
            bytes_accessed=(rows * D_in * x.dtype.itemsize
                            + rows * D_out * x.dtype.itemsize
                            + D_in * D_out * w.dtype.itemsize
                            + D_out * 4),
        ),
    )(x2, w, b2)
    return out.reshape(orig_shape[:-1] + (D_out,))


# ------------------------------ modules --------------------------------------

class LinearPallas:
    """Deterministic Linear used as the `fn` wrapped by PreNorm.

    Weights are stored in bf16 so the MXU runs bf16 x bf16 (f32 accumulation):
    ~4x f32 throughput on v5e and far more on v6e/v7x, and it halves weight
    DMA / VMEM residency.
    """
    # TODO(synk): fp8 weight path on v7x (its MXU has no int8 mode).

    def __init__(self, w, b, compute_dtype=jnp.bfloat16):
        self.w = w.astype(compute_dtype)
        self.b = b.astype(jnp.float32)

    def __call__(self, x, context=None, mask=None):
        return linear(x, self.w, self.b)


class PreNormPallas:
    """JAX/Pallas port of PreNorm(dim, fn, context_dim=None).

    forward(x, context=None, mask=None):
        x = LayerNorm(x)
        if norm_context: context = LayerNorm(context); return fn(x, context, mask)
        return fn(x)

    When `fn` is a LinearPallas the LayerNorm and the Linear are fused into a
    single pallas_call, and (since LinearPallas ignores context/mask) the
    context LayerNorm is skipped entirely — it is dead work whose result would
    be discarded, so the module output is unchanged while a full HBM
    round-trip of `context` is removed.
    """

    def __init__(self, dim, fn, context_dim=None, eps=1e-5):
        self.fn = fn
        self.eps = eps
        # nn.LayerNorm default init: weight=1, bias=0, eps=1e-5
        self.norm_gamma = jnp.ones((dim,), jnp.float32)
        self.norm_beta = jnp.zeros((dim,), jnp.float32)
        if context_dim is not None:
            self.ctx_gamma = jnp.ones((context_dim,), jnp.float32)
            self.ctx_beta = jnp.zeros((context_dim,), jnp.float32)
        else:
            self.ctx_gamma = None
            self.ctx_beta = None

    def __call__(self, x, context=None, mask=None):
        if isinstance(self.fn, LinearPallas):
            # Fused LN+Linear; context LN skipped (LinearPallas ignores it).
            return layernorm_linear(x, self.norm_gamma, self.norm_beta,
                                    self.fn.w, self.fn.b, eps=self.eps)
        x = layernorm(x, self.norm_gamma, self.norm_beta, eps=self.eps)
        if self.ctx_gamma is not None:
            context = layernorm(context, self.ctx_gamma, self.ctx_beta,
                                eps=self.eps)
            return self.fn(x, context, mask)
        return self.fn(x)


# --------------------------------- main ---------------------------------------

if __name__ == "__main__":
    key = jax.random.PRNGKey(0)
    k_x, k_ctx, k_w, k_b = jax.random.split(key, 4)

    B, N, D = 2, 8, 32          # x: (batch, seq, dim)
    M, C = 8, 32                # context: (batch, ctx_seq, context_dim)

    x = jax.random.normal(k_x, (B, N, D), jnp.float32)
    context = jax.random.normal(k_ctx, (B, M, C), jnp.float32)

    w = jax.random.normal(k_w, (D, D), jnp.float32) * 0.05
    b = jax.random.normal(k_b, (D,), jnp.float32) * 0.05
    fn = LinearPallas(w, b)

    # ---- case 1: with context_dim + fused LN+Linear (context LN skipped) ----
    module = PreNormPallas(D, fn, context_dim=C)
    out = jax.block_until_ready(module(x, context=context, mask=None))

    # ---- case 2: no context_dim (fused LN+Linear only) ----
    module2 = PreNormPallas(D, fn)
    out2 = jax.block_until_ready(module2(x))

    # ---- case 3: generic (non-fused) fn with context LayerNorm exercised ----
    module3 = PreNormPallas(D, lambda xn, *a, **k: xn, context_dim=C)
    out3 = jax.block_until_ready(module3(x, context=context, mask=None))

    # ---- also exercise the standalone row/col-tiled linear kernel ----
    lin = jax.block_until_ready(fn(x))

    # ---- sanity check against a pure-JAX f32 reference ----
    def ln_ref(v, g, bt, eps=1e-5):
        mu = v.mean(-1, keepdims=True)
        var = ((v - mu) ** 2).mean(-1, keepdims=True)
        return (v - mu) / jnp.sqrt(var + eps) * g + bt

    ref = ln_ref(x, module.norm_gamma, module.norm_beta) @ w + b
    ref3 = ln_ref(x, module3.norm_gamma, module3.norm_beta)
    # bf16 MXU path vs f32 reference: bf16-activation-level tolerance.
    assert jnp.allclose(out, ref, atol=3e-2, rtol=3e-2)
    assert jnp.allclose(out2, ref, atol=3e-2, rtol=3e-2)
    # pure-f32 LayerNorm path: tight tolerance.
    assert jnp.allclose(out3, ref3, atol=1e-4, rtol=1e-4)
    assert jnp.allclose(lin, x @ w + b, atol=3e-2, rtol=3e-2)
    assert jnp.all(jnp.isfinite(out)) and jnp.all(jnp.isfinite(out3))

    print("KERNEL_OK")
</pallas_src>

<mosaic_0001>
module attributes {stable_mosaic.version = 11 : i64} {
  func.func @_ln_linear_kernel(%arg0: i32, %arg1: i32, %arg2: memref<16x32xf32, #tpu.memory_space<vmem>>, %arg3: memref<1x32xf32, #tpu.memory_space<vmem>>, %arg4: memref<1x32xf32, #tpu.memory_space<vmem>>, %arg5: memref<32x32xbf16, #tpu.memory_space<vmem>>, %arg6: memref<1x32xf32, #tpu.memory_space<vmem>>, %arg7: memref<16x32xf32, #tpu.memory_space<vmem>>) attributes {dimension_semantics = [#tpu.dimension_semantics<parallel>, #tpu.dimension_semantics<parallel>], iteration_bounds = array<i64: 1, 1>, scalar_prefetch = 0 : i64, scratch_operands = 0 : i64, tpu.core_type = #tpu.core_type<tc>, window_params = [{transform_indices = @transform_0, window_bounds = array<i64: 16, 32>}, {pipeline_mode = #tpu.pipeline_mode<synchronous>, transform_indices = @transform_1, window_bounds = array<i64: 1, 32>}, {pipeline_mode = #tpu.pipeline_mode<synchronous>, transform_indices = @transform_2, window_bounds = array<i64: 1, 32>}, {transform_indices = @transform_3, window_bounds = array<i64: 32, 32>}, {transform_indices = @transform_4, window_bounds = array<i64: 1, 32>}, {transform_indices = @transform_5, window_bounds = array<i64: 16, 32>}]} {
    %c0 = arith.constant 0 : index
    %c0_0 = arith.constant 0 : index
    %0 = vector.load %arg2[%c0, %c0_0] : memref<16x32xf32, #tpu.memory_space<vmem>>, vector<16x32xf32>
    %cst = arith.constant dense<0.000000e+00> : vector<16xf32>
    %1 = vector.multi_reduction <add>, %0, %cst [1] : vector<16x32xf32> to vector<16xf32>
    %2 = vector.shape_cast %1 : vector<16xf32> to vector<16x1xf32>
    %cst_1 = arith.constant 3.200000e+01 : f32
    %3 = vector.broadcast %cst_1 : f32 to vector<16x1xf32>
    %4 = arith.divf %2, %3 : vector<16x1xf32>
    %5 = vector.broadcast %4 : vector<16x1xf32> to vector<16x32xf32>
    %6 = arith.subf %0, %5 : vector<16x32xf32>
    %7 = arith.mulf %6, %6 : vector<16x32xf32>
    %cst_2 = arith.constant dense<0.000000e+00> : vector<16xf32>
    %8 = vector.multi_reduction <add>, %7, %cst_2 [1] : vector<16x32xf32> to vector<16xf32>
    %9 = vector.shape_cast %8 : vector<16xf32> to vector<16x1xf32>
    %cst_3 = arith.constant 3.200000e+01 : f32
    %10 = vector.broadcast %cst_3 : f32 to vector<16x1xf32>
    %11 = arith.divf %9, %10 : vector<16x1xf32>
    %cst_4 = arith.constant 9.99999974E-6 : f32
    %12 = vector.broadcast %cst_4 : f32 to vector<16x1xf32>
    %13 = arith.addf %11, %12 : vector<16x1xf32>
    %14 = math.rsqrt %13 : vector<16x1xf32>
    %15 = vector.broadcast %14 : vector<16x1xf32> to vector<16x32xf32>
    %16 = arith.mulf %6, %15 : vector<16x32xf32>
    %c0_5 = arith.constant 0 : index
    %c0_6 = arith.constant 0 : index
    %17 = vector.load %arg3[%c0_5, %c0_6] : memref<1x32xf32, #tpu.memory_space<vmem>>, vector<1x32xf32>
    %18 = vector.broadcast %17 : vector<1x32xf32> to vector<16x32xf32>
    %19 = arith.mulf %16, %18 : vector<16x32xf32>
    %c0_7 = arith.constant 0 : index
    %c0_8 = arith.constant 0 : index
    %20 = vector.load %arg4[%c0_7, %c0_8] : memref<1x32xf32, #tpu.memory_space<vmem>>, vector<1x32xf32>
    %21 = vector.broadcast %20 : vector<1x32xf32> to vector<16x32xf32>
    %22 = arith.addf %19, %21 : vector<16x32xf32>
    %23 = arith.truncf %22 : vector<16x32xf32> to vector<16x32xbf16>
    %c0_9 = arith.constant 0 : index
    %c0_10 = arith.constant 0 : index
    %24 = vector.load %arg5[%c0_9, %c0_10] : memref<32x32xbf16, #tpu.memory_space<vmem>>, vector<32x32xbf16>
    %cst_11 = arith.constant dense<0.000000e+00> : vector<16x32xf32>
    %25 = tpu.matmul %23, %24, %cst_11 {dimension_numbers = #tpu.dot_dimension_numbers<[1], [0], [0], [1], [0, 0, 1, 1], [], []>} : vector<16x32xbf16>, vector<32x32xbf16>, vector<16x32xf32> -> vector<16x32xf32>
    %c0_12 = arith.constant 0 : index
    %c0_13 = arith.constant 0 : index
    %26 = vector.load %arg6[%c0_12, %c0_13] : memref<1x32xf32, #tpu.memory_space<vmem>>, vector<1x32xf32>
    %27 = vector.broadcast %26 : vector<1x32xf32> to vector<16x32xf32>
    %28 = arith.addf %25, %27 : vector<16x32xf32>
    %c0_14 = arith.constant 0 : index
    %c0_15 = arith.constant 0 : index
    %29 = vector.load %arg7[%c0_14, %c0_15] : memref<16x32xf32, #tpu.memory_space<vmem>>, vector<16x32xf32>
    tpu.vector_store %arg7[%c0_14, %c0_15], %28 {strides = array<i32>} : memref<16x32xf32, #tpu.memory_space<vmem>>, vector<16x32xf32>,
    return
  }
  func.func @transform_0(%arg0: i32, %arg1: i32) -> (i32, i32) {
    %c0_i32 = arith.constant 0 : i32
    %c0_i32_0 = arith.constant 0 : i32
    return %arg0, %c0_i32 : i32, i32
  }
  func.func @transform_1(%arg0: i32, %arg1: i32) -> (i32, i32) {
    %c0_i32 = arith.constant 0 : i32
    %c0_i32_0 = arith.constant 0 : i32
    %c0_i32_1 = arith.constant 0 : i32
    return %c0_i32, %c0_i32_0 : i32, i32
  }
  func.func @transform_2(%arg0: i32, %arg1: i32) -> (i32, i32) {
    %c0_i32 = arith.constant 0 : i32
    %c0_i32_0 = arith.constant 0 : i32
    %c0_i32_1 = arith.constant 0 : i32
    return %c0_i32, %c0_i32_0 : i32, i32
  }
  func.func @transform_3(%arg0: i32, %arg1: i32) -> (i32, i32) {
    %c0_i32 = arith.constant 0 : i32
    %c0_i32_0 = arith.constant 0 : i32
    return %c0_i32, %arg1 : i32, i32
  }
  func.func @transform_4(%arg0: i32, %arg1: i32) -> (i32, i32) {
    %c0_i32 = arith.constant 0 : i32
    %c0_i32_0 = arith.constant 0 : i32
    return %c0_i32, %arg1 : i32, i32
  }
  func.func @transform_5(%arg0: i32, %arg1: i32) -> (i32, i32) {
    %c0_i32 = arith.constant 0 : i32
    return %arg0, %arg1 : i32, i32
  }
}

</mosaic_0001>

<bundles_post_ra>
// kernel: tpu_custom_call.1
= control target key start
LH: loop header
LB: loop body
LE: loop exit
PB: predicated region body
PF: predicated region fallthrough
CT: control target
= control target key end

     0   :  { %10 = vsyncpa [#allocation3], 0  ;;  %s354_s0 = inlined_call_operand.hbm [shape: f32[16,32], index: 0, kind: input, shape index: {}]   ;;  %s355_s1 = inlined_call_operand.vmem [shape: f32[1,32], index: 1, kind: input, shape index: {}]   ;;  %s356_s2 = inlined_call_operand.vmem [shape: f32[1,32], index: 2, kind: input, shape index: {}]   ;;  %s357_s3 = inlined_call_operand.hbm [shape: bf16[32,32], index: 3, kind: input, shape index: {}]   ;;  %s358_s4 = inlined_call_operand.vmem [shape: f32[1,32], index: 4, kind: input, shape index: {}]   ;;  %s359_s5 = inlined_call_operand.hbm [shape: f32[16,32], index: 5, kind: output, shape index: {}]  }
   0x1   :  { %11 = vsyncpa [#allocation6], 0 }
   0x2   :  { %12 = vsyncpa [#allocation4], 0  ;;  %s284_s18 = smov [#allocation2]  }
   0x3   :  { %s18_s19 = sshll.u32 %s284_s18, 4  ;;  %s19_s19 = int_to_ptr.vmem [resolvable:$true] %s18_s19 }
   0x4   :  { %s226_s20 = scalar_lea.vmem %s19_s19, 256  ;;  %p231_p1 = scmp.lt.s32.totalorder %s19_s19, %s19_s19 }
   0x5   :  { %p227_p0 = scmp.ne.s32.totalorder %s19_s19, %s226_s20  ;;  %p232_p2 = scmp.lt.s32.totalorder %s226_s20, %s226_s20 }
   0x7   :  { %p233_p3 = por %p232_p2, %p231_p1 }
   0x9   :  { %p234_p4 = pnand %p233_p3, %p227_p0 }
   0xb   :  { %237 = shalt.err (!%p234_p4)
}
   0xc   :  { %s285_s21 = smov 128   ;;  %s286_s22 = smov 8  }
   0xd   :  { %24 = dma.hbm_to_vmem [thread:$0]  %s354_s0, 256, %s19_s19, [#allocation3], %s285_s21, %s285_s21, %s286_s22  }
   0xe   :  { %s287_s25 = smov [#allocation5]  }
   0xf   :  { %s34_s26 = sshll.u32 %s287_s25, 4  ;;  %s35_s26 = int_to_ptr.vmem [resolvable:$true] %s34_s26 }
  0x10   :  { %s246_s27 = scalar_lea.vmem %s35_s26, 256  ;;  %p251_p6 = scmp.lt.s32.totalorder %s35_s26, %s35_s26 }
  0x11   :  { %p247_p5 = scmp.ne.s32.totalorder %s35_s26, %s246_s27  ;;  %p252_p7 = scmp.lt.s32.totalorder %s246_s27, %s246_s27 }
  0x13   :  { %p253_p8 = por %p252_p7, %p251_p6 }
  0x15   :  { %p254_p9 = pnand %p253_p8, %p247_p5 }
  0x17   :  { %257 = shalt.err (!%p254_p9)
}
  0x18   :  { %s288_s28 = smov 64   ;;  %s289_s29 = smov 4  }
  0x19   :  { %40 = dma.hbm_to_vmem [thread:$0]  %s357_s3, 256, %s35_s26, [#allocation6], %s288_s28, %s288_s28, %s289_s29  }
  0x1a   :  { %278 = dma.done.wait [#allocation3], 256  }
  0x1b   :  { %279 = vsyncadd [#allocation3], 4294967040 }
  0x1c   :  { %280 = dma.done.wait [#allocation6], 256  }
  0x1d   :  { %281 = vsyncadd [#allocation6], 4294967040  ;;  %vm52_vm0 = vcmask 261120   ;;  %v50_v0 = vld [vmem:[#allocation2] sm:$0xff]  ;;  %v51_v1 = vld [vmem:[#allocation2 + $0x8] sm:$0xff]  ;;  %v290_v15 = vmov 0.0  }
  0x1e   :  { %v53_v2 = vsel %vm52_vm0, %v50_v0, 0.0  ;;  %v56_v3 = vsel %vm52_vm0, %v51_v1, 0.0  ;;  %v212_v14 = vld [vmem:[#allocation5 + $0x8] sm:$0xff]   ;;  %195 = vmatprep.subr.bf16.mxu0 %v290_v15  ;;  %vm291_vm1 = vmmov 0   ;;  %v213_v16 = vld [vmem:[#allocation5] sm:$0xff]  }
  0x1f   :  { %54 = vadd.xlane.f32.xlu0 %v53_v2  ;;  %199 = vmatprep.mubr.msk.bf16.mxu0 %vm291_vm1, %v290_v15  ;;  %v186_v25 = vld [vmem:[%s355_s1] ss:$0 sm:$0xff]  ;;  %s292_s1 = smov [#allocation7]  }
  0x20   :  { %196 = vmatpush3.bf16.msra.mxu0 %v212_v14  ;;  %v187_v29 = vld [vmem:[%s356_s2] ss:$0 sm:$0xff]  ;;  %s173_s11 = sshll.u32 %s292_s1, 4  ;;  %s174_s11 = int_to_ptr.vmem [resolvable:$true] %s173_s11 }
  0x21   :  { %197 = vmatprep.subr.bf16.mxu0 %v290_v15  ;;  %v188_v34 = vld [vmem:[%s358_s4] ss:$0 sm:$0xff]  ;;  %s258_s2 = scalar_lea.vmem %s174_s11, 256  ;;  %p263_p11 = scmp.lt.s32.totalorder %s174_s11, %s174_s11 }
  0x22   :  { %p259_p10 = scmp.ne.s32.totalorder %s174_s11, %s258_s2  ;;  %p264_p12 = scmp.lt.s32.totalorder %s258_s2, %s258_s2 }
  0x23   :  { %57 = vadd.xlane.f32.xlu0 %v56_v3 }
  0x24   :  { %198 = vmatpush3.bf16.msra.mxu0 %v213_v16  ;;  %p265_p13 = por %p264_p12, %p263_p11 }
  0x26   :  { %p266_p0 = pnand %p265_p13, %p259_p10 }
  0xa8   :  { %v55_v4 = vpop.xlane.xlu0 %54 }
  0xa9   :  { %v60_v5 = vmul.f32 0.03125, %v55_v4 }
  0xab   :  { %v62_v6 = vsub.f32 %v50_v0, %v60_v5 }
  0xac   :  { %v58_v7 = vpop.xlane.xlu0 %57 }
  0xad   :  { %v61_v8 = vmul.f32 0.03125, %v58_v7  ;;  %v64_v9 = vmul.f32 %v62_v6, %v62_v6 }
  0xaf   :  { %v63_v10 = vsub.f32 %v51_v1, %v61_v8  ;;  %v66_v11 = vsel %vm52_vm0, %v64_v9, 0.0 }
  0xb0   :  { %67 = vadd.xlane.f32.xlu1 %v66_v11 }
  0xb1   :  { %v65_v12 = vmul.f32 %v63_v10, %v63_v10 }
  0xb3   :  { %v69_v13 = vsel %vm52_vm0, %v65_v12, 0.0 }
  0xb4   :  { %70 = vadd.xlane.f32.xlu1 %v69_v13 }
 0x139   :  { %v68_v17 = vpop.xlane.xlu1 %67 }
 0x13a   :  { %v72_v18 = vmul.f32 0.03125, %v68_v17 }
 0x13c   :  { %v74_v19 = vadd.f32 1e-05, %v72_v18 }
 0x13d   :  { %v71_v20 = vpop.xlane.xlu1 %70 }
 0x13e   :  { %214 = vrsqrt.f32 %v74_v19  ;;  %v73_v21 = vmul.f32 0.03125, %v71_v20 }
 0x140   :  { %v75_v22 = vadd.f32 1e-05, %v73_v21 }
 0x142   :  { %216 = vrsqrt.f32 %v75_v22 }
 0x14b   :  { %v215_v23 = vpop.eup %214 }
 0x14c   :  { %v78_v24 = vmul.f32 %v215_v23, %v62_v6 }
 0x14e   :  { %v87_v28 = vmul.f32 %v186_v25, %v78_v24 }
 0x14f   :  { %v217_v26 = vpop.eup %216 }
 0x150   :  { %v79_v27 = vmul.f32 %v217_v26, %v63_v10  ;;  %v96_v31 = vadd.f32 %v187_v29, %v87_v28 }
 0x152   :  { %v88_v30 = vmul.f32 %v186_v25, %v79_v27 }
 0x154   :  { %v97_v32 = vadd.f32 %v187_v29, %v88_v30 }
 0x156   :  { %v98_v33 = vpack.c.bf16 %v97_v32, %v96_v31 }
 0x158   :  { %200 = vmatmul.mubr.msk.bf16.vlgmr.msra.gmra.mxu0 %vm52_vm0, %v98_v33 }
 0x218   :  { %v159_v35 = vpop.f32.mrf.mxu0 }
 0x219   :  { %v160_v36 = vadd.f32 %v188_v34, %v159_v35 }
 0x21a   :  { %v201_v37 = vpop.f32.mrf.mxu0 }
 0x21b   :  { %166 = vst.msk [vmem:[#allocation7] sm:$0xff] %vm52_vm0, %v160_v36 }
 0x21c   :  { %v162_v38 = vpop.f32.mrf.mxu0 }
 0x21d   :  { %v163_v39 = vadd.f32 %v188_v34, %v162_v38 }
 0x21e   :  { %v202_v40 = vpop.f32.mrf.mxu0 }
 0x21f   :  { %167 = vst.msk [vmem:[#allocation7 + $0x8] sm:$0xff] %vm52_vm0, %v163_v39 }
 0x220   :  { %269 = shalt.err (!%p266_p0)
}
 0x221   :  { %179 = dma.vmem_to_hbm [thread:$0]  %s174_s11, 256, %s359_s5, [#allocation4], %s285_s21, %s285_s21, %s286_s22  }
 0x222   :  { %282 = dma.done.wait [#allocation4], 256  }
 0x223   :  { %283 = vsyncadd [#allocation4], 4294967040 }
 0x224   :  { %183 = vsyncpa [#allocation3], 1 }
 0x225   :  { %184 = vsyncpa [#allocation6], 1 }
 0x226   :  { %185 = vsyncpa [#allocation4], 1 }

</bundles_post_ra>
